<compile_context>
chip_gen: v7x
topology: tpu7x:2x2x1
jax: 0.10.0
libtpu: 0.0.40
codegen_flags: <defaults>
</compile_context>

<pallas_src>
import functools

import jax
import jax.numpy as jnp
from jax.experimental import pallas as pl
from jax.experimental.pallas import tpu as pltpu


def _dice_kernel(logits_ref, target_ref, out_ref, inter_acc, union_acc, *,
                 class_ids, smooth):
    s = pl.program_id(1)

    @pl.when(s == 0)
    def _init():
        inter_acc[...] = jnp.zeros_like(inter_acc)
        union_acc[...] = jnp.zeros_like(union_acc)

    x = logits_ref[...].astype(jnp.float32)        # (TB, C, TS)
    lab = target_ref[...]                          # (TB, 1, TS) int32

    # Static channel select: class_ids are compile-time Python ints, so this
    # is a set of static sublane slices (no captured constant arrays).
    x_sel = jnp.concatenate([x[:, c:c + 1, :] for c in class_ids], axis=1)  # (TB, K, TS)

    # Numerically stable softmax over the selected-class axis.
    m = jnp.max(x_sel, axis=1, keepdims=True)
    e = jnp.exp(x_sel - m)
    p = e * pl.reciprocal(jnp.sum(e, axis=1, keepdims=True), approx=True)

    # One-hot target restricted to class_ids, built from scalar compares.
    t = jnp.concatenate([(lab == c).astype(jnp.float32) for c in class_ids],
                        axis=1)                    # (TB, K, TS)

    # Accumulate linear partial sums across spatial tiles (dice ratio is
    # non-linear -> only formed at finalize).
    inter_acc[...] += jnp.sum(p * t, axis=2, keepdims=True)            # (TB, K, 1)
    union_acc[...] += (jnp.sum(p, axis=2, keepdims=True)
                       + jnp.sum(t, axis=2, keepdims=True))            # (TB, K, 1)

    @pl.when(s == pl.num_programs(1) - 1)
    def _finalize():
        dice = 2.0 * (inter_acc[...] + smooth) / (union_acc[...] + smooth)  # (TB, K, 1)
        per_b = jnp.sum(dice, axis=1, keepdims=True)                        # (TB, 1, 1)
        out_ref[...] = jnp.broadcast_to(per_b, out_ref.shape)               # lane-dense store


def _choose_tiles(B, C, S, logits_itemsize, target_itemsize,
                  tile_budget_bytes=2 << 20):
    """Pick (TB, TS): spatial tile multiple of 128 dividing S, ~<=2 MiB per tile
    so the double-buffered working set is well under 16 MiB scoped VMEM on all
    generations (v5e/v6e/v7x)."""
    bytes_per_pos = C * logits_itemsize + target_itemsize
    if S % 128 == 0:
        nl = S // 128
        ts = 128
        for d in range(1, nl + 1):
            if nl % d == 0 and d * 128 * bytes_per_pos <= tile_budget_bytes:
                ts = d * 128
    else:
        # Fall back to the full spatial extent (block == full array dim is legal).
        ts = S
    tb = 1
    if ts == S:
        # Whole image fits in one tile: pack batches per step to amortize
        # per-grid-step overhead.
        for d in range(1, B + 1):
            if B % d == 0 and d * ts * bytes_per_pos <= tile_budget_bytes:
                tb = d
    return tb, ts


def custom_soft_dice_loss(logits, target, *, n_classes, class_ids, smooth=0.01):
    """logits: (B, C, H, W) float (native dtype); target: (B, H, W) int labels."""
    B, C, H, W = logits.shape
    K = len(class_ids)
    S = H * W

    x = logits.reshape(B, C, S)                      # native dtype, no gather/cast
    tgt = target.astype(jnp.int32).reshape(B, 1, S)

    TB, TS = _choose_tiles(B, C, S, x.dtype.itemsize, tgt.dtype.itemsize)
    grid = (B // TB, S // TS)

    kernel = functools.partial(
        _dice_kernel,
        class_ids=tuple(int(c) for c in class_ids),
        smooth=float(smooth),
    )

    out = pl.pallas_call(
        kernel,
        out_shape=jax.ShapeDtypeStruct((B, 8, 128), jnp.float32),
        grid=grid,
        in_specs=[
            pl.BlockSpec((TB, C, TS), lambda b, s: (b, 0, s)),
            pl.BlockSpec((TB, 1, TS), lambda b, s: (b, 0, s)),
        ],
        out_specs=pl.BlockSpec((TB, 8, 128), lambda b, s: (b, 0, 0)),
        scratch_shapes=[
            pltpu.VMEM((TB, K, 1), jnp.float32),   # inter partials
            pltpu.VMEM((TB, K, 1), jnp.float32),   # union partials
        ],
        compiler_params=pltpu.CompilerParams(
            dimension_semantics=("parallel", "arbitrary")),
    )(x, tgt)

    score = jnp.sum(out[:, 0, 0])
    return 1.0 - score / (float(B) * float(n_classes))


def _reference(logits, target, *, n_classes, class_ids, smooth=0.01):
    B, C, H, W = logits.shape
    cid = jnp.asarray(class_ids, dtype=jnp.int32)
    x = jax.nn.softmax(jnp.take(logits, cid, axis=1), axis=1).reshape(
        B, len(class_ids), -1)
    one_hot = jax.nn.one_hot(target, n_classes, axis=1)          # (B, n_classes, H, W)
    t = one_hot.reshape(B, n_classes, -1)[:, cid, :]
    inter = jnp.sum(x * t, axis=2) + smooth
    union = jnp.sum(x, axis=2) + jnp.sum(t, axis=2) + smooth
    score = jnp.sum(2.0 * inter / union)
    return 1.0 - score / (float(B) * float(n_classes))


if __name__ == "__main__":
    B, C, H, W = 2, 4, 16, 16
    n_classes = 4
    class_ids = [1, 2, 3]

    key = jax.random.PRNGKey(0)
    k1, k2 = jax.random.split(key)
    logits = jax.random.normal(k1, (B, C, H, W), dtype=jnp.float32)
    target = jax.random.randint(k2, (B, H, W), 0, n_classes, dtype=jnp.int32)

    loss = custom_soft_dice_loss(logits, target, n_classes=n_classes,
                                 class_ids=class_ids)
    loss = jax.block_until_ready(loss)

    ref = _reference(logits, target, n_classes=n_classes, class_ids=class_ids)
    # Tolerance loosened slightly because the softmax denominator uses the
    # approx (EUP) reciprocal per the perf review.
    assert jnp.allclose(loss, ref, atol=1e-3, rtol=1e-3), (loss, ref)

    print("KERNEL_OK")
</pallas_src>

<mosaic_0001>
module attributes {stable_mosaic.version = 11 : i64} {
  func.func @_dice_kernel(%arg0: i32, %arg1: i32, %arg2: memref<2x4x256xf32, #tpu.memory_space<vmem>>, %arg3: memref<2x1x256xi32, #tpu.memory_space<vmem>>, %arg4: memref<2x8x128xf32, #tpu.memory_space<vmem>>, %arg5: memref<2x3x1xf32, #tpu.memory_space<vmem>>, %arg6: memref<2x3x1xf32, #tpu.memory_space<vmem>>) attributes {dimension_semantics = [#tpu.dimension_semantics<parallel>, #tpu.dimension_semantics<arbitrary>], iteration_bounds = array<i64: 1, 1>, scalar_prefetch = 0 : i64, scratch_operands = 2 : i64, tpu.core_type = #tpu.core_type<tc>, window_params = [{transform_indices = @transform_0, window_bounds = array<i64: 2, 4, 256>}, {transform_indices = @transform_1, window_bounds = array<i64: 2, 1, 256>}, {transform_indices = @transform_2, window_bounds = array<i64: 2, 8, 128>}]} {
    %c0_i32 = arith.constant 0 : i32
    %0 = arith.cmpi eq, %arg1, %c0_i32 : i32
    %1 = arith.extui %0 : i1 to i32
    %c0_i32_0 = arith.constant 0 : i32
    %2 = arith.cmpi ne, %1, %c0_i32_0 : i32
    scf.if %2 {
      %cst_24 = arith.constant 0.000000e+00 : f32
      %49 = vector.broadcast %cst_24 : f32 to vector<2x3x1xf32>
      %c0_25 = arith.constant 0 : index
      %c0_26 = arith.constant 0 : index
      %c0_27 = arith.constant 0 : index
      %50 = vector.load %arg5[%c0_25, %c0_26, %c0_27] : memref<2x3x1xf32, #tpu.memory_space<vmem>>, vector<2x3x1xf32>
      tpu.vector_store %arg5[%c0_25, %c0_26, %c0_27], %49 {strides = array<i32>} : memref<2x3x1xf32, #tpu.memory_space<vmem>>, vector<2x3x1xf32>,
      %cst_28 = arith.constant 0.000000e+00 : f32
      %51 = vector.broadcast %cst_28 : f32 to vector<2x3x1xf32>
      %c0_29 = arith.constant 0 : index
      %c0_30 = arith.constant 0 : index
      %c0_31 = arith.constant 0 : index
      %52 = vector.load %arg6[%c0_29, %c0_30, %c0_31] : memref<2x3x1xf32, #tpu.memory_space<vmem>>, vector<2x3x1xf32>
      tpu.vector_store %arg6[%c0_29, %c0_30, %c0_31], %51 {strides = array<i32>} : memref<2x3x1xf32, #tpu.memory_space<vmem>>, vector<2x3x1xf32>,
    } else {
    }
    %c0 = arith.constant 0 : index
    %c0_1 = arith.constant 0 : index
    %c0_2 = arith.constant 0 : index
    %3 = vector.load %arg2[%c0, %c0_1, %c0_2] : memref<2x4x256xf32, #tpu.memory_space<vmem>>, vector<2x4x256xf32>
    %c0_3 = arith.constant 0 : index
    %c0_4 = arith.constant 0 : index
    %c0_5 = arith.constant 0 : index
    %4 = vector.load %arg3[%c0_3, %c0_4, %c0_5] : memref<2x1x256xi32, #tpu.memory_space<vmem>>, vector<2x1x256xi32>
    %5 = vector.extract_strided_slice %3 {offsets = [0, 1, 0], sizes = [2, 1, 256], strides = [1, 1, 1]} : vector<2x4x256xf32> to vector<2x1x256xf32>
    %6 = vector.extract_strided_slice %3 {offsets = [0, 2, 0], sizes = [2, 1, 256], strides = [1, 1, 1]} : vector<2x4x256xf32> to vector<2x1x256xf32>
    %7 = vector.extract_strided_slice %3 {offsets = [0, 3, 0], sizes = [2, 1, 256], strides = [1, 1, 1]} : vector<2x4x256xf32> to vector<2x1x256xf32>
    %8 = tpu.concatenate %5, %6, %7 in 1 : vector<2x1x256xf32>, vector<2x1x256xf32>, vector<2x1x256xf32> -> vector<2x3x256xf32>
    %cst = arith.constant dense<0xFF800000> : vector<2x256xf32>
    %9 = vector.multi_reduction <maximumf>, %8, %cst [1] : vector<2x3x256xf32> to vector<2x256xf32>
    %10 = vector.shape_cast %9 : vector<2x256xf32> to vector<2x1x256xf32>
    %11 = vector.broadcast %10 : vector<2x1x256xf32> to vector<2x3x256xf32>
    %12 = arith.subf %8, %11 : vector<2x3x256xf32>
    %13 = math.exp %12 : vector<2x3x256xf32>
    %cst_6 = arith.constant dense<0.000000e+00> : vector<2x256xf32>
    %14 = vector.multi_reduction <add>, %13, %cst_6 [1] : vector<2x3x256xf32> to vector<2x256xf32>
    %15 = vector.shape_cast %14 : vector<2x256xf32> to vector<2x1x256xf32>
    %16 = tpu.reciprocal %15 {approx = true} : vector<2x1x256xf32> -> vector<2x1x256xf32>
    %17 = vector.broadcast %16 : vector<2x1x256xf32> to vector<2x3x256xf32>
    %18 = arith.mulf %13, %17 : vector<2x3x256xf32>
    %c1_i32 = arith.constant 1 : i32
    %19 = vector.broadcast %c1_i32 : i32 to vector<2x1x256xi32>
    %20 = arith.cmpi eq, %4, %19 : vector<2x1x256xi32>
    %21 = arith.extui %20 : vector<2x1x256xi1> to vector<2x1x256xi32>
    %22 = arith.sitofp %21 : vector<2x1x256xi32> to vector<2x1x256xf32>
    %c2_i32 = arith.constant 2 : i32
    %23 = vector.broadcast %c2_i32 : i32 to vector<2x1x256xi32>
    %24 = arith.cmpi eq, %4, %23 : vector<2x1x256xi32>
    %25 = arith.extui %24 : vector<2x1x256xi1> to vector<2x1x256xi32>
    %26 = arith.sitofp %25 : vector<2x1x256xi32> to vector<2x1x256xf32>
    %c3_i32 = arith.constant 3 : i32
    %27 = vector.broadcast %c3_i32 : i32 to vector<2x1x256xi32>
    %28 = arith.cmpi eq, %4, %27 : vector<2x1x256xi32>
    %29 = arith.extui %28 : vector<2x1x256xi1> to vector<2x1x256xi32>
    %30 = arith.sitofp %29 : vector<2x1x256xi32> to vector<2x1x256xf32>
    %31 = tpu.concatenate %22, %26, %30 in 1 : vector<2x1x256xf32>, vector<2x1x256xf32>, vector<2x1x256xf32> -> vector<2x3x256xf32>
    %c0_7 = arith.constant 0 : index
    %c0_8 = arith.constant 0 : index
    %c0_9 = arith.constant 0 : index
    %32 = vector.load %arg5[%c0_7, %c0_8, %c0_9] : memref<2x3x1xf32, #tpu.memory_space<vmem>>, vector<2x3x1xf32>
    %33 = arith.mulf %18, %31 : vector<2x3x256xf32>
    %cst_10 = arith.constant dense<0.000000e+00> : vector<2x3xf32>
    %34 = vector.multi_reduction <add>, %33, %cst_10 [2] : vector<2x3x256xf32> to vector<2x3xf32>
    %35 = vector.shape_cast %34 : vector<2x3xf32> to vector<2x3x1xf32>
    %36 = arith.addf %32, %35 : vector<2x3x1xf32>
    %c0_11 = arith.constant 0 : index
    %c0_12 = arith.constant 0 : index
    %c0_13 = arith.constant 0 : index
    %37 = vector.load %arg5[%c0_11, %c0_12, %c0_13] : memref<2x3x1xf32, #tpu.memory_space<vmem>>, vector<2x3x1xf32>
    tpu.vector_store %arg5[%c0_11, %c0_12, %c0_13], %36 {strides = array<i32>} : memref<2x3x1xf32, #tpu.memory_space<vmem>>, vector<2x3x1xf32>,
    %c0_14 = arith.constant 0 : index
    %c0_15 = arith.constant 0 : index
    %c0_16 = arith.constant 0 : index
    %38 = vector.load %arg6[%c0_14, %c0_15, %c0_16] : memref<2x3x1xf32, #tpu.memory_space<vmem>>, vector<2x3x1xf32>
    %cst_17 = arith.constant dense<0.000000e+00> : vector<2x3xf32>
    %39 = vector.multi_reduction <add>, %18, %cst_17 [2] : vector<2x3x256xf32> to vector<2x3xf32>
    %40 = vector.shape_cast %39 : vector<2x3xf32> to vector<2x3x1xf32>
    %cst_18 = arith.constant dense<0.000000e+00> : vector<2x3xf32>
    %41 = vector.multi_reduction <add>, %31, %cst_18 [2] : vector<2x3x256xf32> to vector<2x3xf32>
    %42 = vector.shape_cast %41 : vector<2x3xf32> to vector<2x3x1xf32>
    %43 = arith.addf %40, %42 : vector<2x3x1xf32>
    %44 = arith.addf %38, %43 : vector<2x3x1xf32>
    %c0_19 = arith.constant 0 : index
    %c0_20 = arith.constant 0 : index
    %c0_21 = arith.constant 0 : index
    %45 = vector.load %arg6[%c0_19, %c0_20, %c0_21] : memref<2x3x1xf32, #tpu.memory_space<vmem>>, vector<2x3x1xf32>
    tpu.vector_store %arg6[%c0_19, %c0_20, %c0_21], %44 {strides = array<i32>} : memref<2x3x1xf32, #tpu.memory_space<vmem>>, vector<2x3x1xf32>,
    %c0_i32_22 = arith.constant 0 : i32
    %46 = arith.cmpi eq, %arg1, %c0_i32_22 : i32
    %47 = arith.extui %46 : i1 to i32
    %c0_i32_23 = arith.constant 0 : i32
    %48 = arith.cmpi ne, %47, %c0_i32_23 : i32
    scf.if %48 {
      %c0_24 = arith.constant 0 : index
      %c0_25 = arith.constant 0 : index
      %c0_26 = arith.constant 0 : index
      %49 = vector.load %arg5[%c0_24, %c0_25, %c0_26] : memref<2x3x1xf32, #tpu.memory_space<vmem>>, vector<2x3x1xf32>
      %cst_27 = arith.constant 0.00999999977 : f32
      %50 = vector.broadcast %cst_27 : f32 to vector<2x3x1xf32>
      %51 = arith.addf %49, %50 : vector<2x3x1xf32>
      %cst_28 = arith.constant 2.000000e+00 : f32
      %52 = vector.broadcast %cst_28 : f32 to vector<2x3x1xf32>
      %53 = arith.mulf %52, %51 : vector<2x3x1xf32>
      %c0_29 = arith.constant 0 : index
      %c0_30 = arith.constant 0 : index
      %c0_31 = arith.constant 0 : index
      %54 = vector.load %arg6[%c0_29, %c0_30, %c0_31] : memref<2x3x1xf32, #tpu.memory_space<vmem>>, vector<2x3x1xf32>
      %cst_32 = arith.constant 0.00999999977 : f32
      %55 = vector.broadcast %cst_32 : f32 to vector<2x3x1xf32>
      %56 = arith.addf %54, %55 : vector<2x3x1xf32>
      %57 = arith.divf %53, %56 : vector<2x3x1xf32>
      %cst_33 = arith.constant dense<0.000000e+00> : vector<2x1xf32>
      %58 = vector.multi_reduction <add>, %57, %cst_33 [1] : vector<2x3x1xf32> to vector<2x1xf32>
      %59 = vector.shape_cast %58 : vector<2x1xf32> to vector<2x1x1xf32>
      %60 = vector.shape_cast %59 : vector<2x1x1xf32> to vector<2x1x1xf32>
      %61 = vector.broadcast %60 : vector<2x1x1xf32> to vector<2x8x128xf32>
      %c0_34 = arith.constant 0 : index
      %c0_35 = arith.constant 0 : index
      %c0_36 = arith.constant 0 : index
      %62 = vector.load %arg4[%c0_34, %c0_35, %c0_36] : memref<2x8x128xf32, #tpu.memory_space<vmem>>, vector<2x8x128xf32>
      tpu.vector_store %arg4[%c0_34, %c0_35, %c0_36], %61 {strides = array<i32>} : memref<2x8x128xf32, #tpu.memory_space<vmem>>, vector<2x8x128xf32>,
    } else {
    }
    return
  }
  func.func @transform_0(%arg0: i32, %arg1: i32) -> (i32, i32, i32) {
    %c0_i32 = arith.constant 0 : i32
    %c0_i32_0 = arith.constant 0 : i32
    return %arg0, %c0_i32, %arg1 : i32, i32, i32
  }
  func.func @transform_1(%arg0: i32, %arg1: i32) -> (i32, i32, i32) {
    %c0_i32 = arith.constant 0 : i32
    %c0_i32_0 = arith.constant 0 : i32
    return %arg0, %c0_i32, %arg1 : i32, i32, i32
  }
  func.func @transform_2(%arg0: i32, %arg1: i32) -> (i32, i32, i32) {
    %c0_i32 = arith.constant 0 : i32
    %c0_i32_0 = arith.constant 0 : i32
    %c0_i32_1 = arith.constant 0 : i32
    return %arg0, %c0_i32, %c0_i32_0 : i32, i32, i32
  }
}

</mosaic_0001>

<bundles_post_ra>
// kernel: tpu_custom_call.1
= control target key start
LH: loop header
LB: loop body
LE: loop exit
PB: predicated region body
PF: predicated region fallthrough
CT: control target
= control target key end

     0   :  { %7 = vsyncpa [#allocation5], 0  ;;  %s698_s0 = inlined_call_operand.hbm [shape: f32[2,4,256], index: 0, kind: input, shape index: {}]   ;;  %s699_s1 = inlined_call_operand.hbm [shape: s32[2,1,256], index: 1, kind: input, shape index: {}]   ;;  %s700_s2 = inlined_call_operand.hbm [shape: f32[2,8,128], index: 2, kind: output, shape index: {}]  }
   0x1   :  { %8 = vsyncpa [#allocation8], 0 }
   0x2   :  { %9 = vsyncpa [#allocation6], 0  ;;  %s513_s9 = smov [#allocation4]   ;;  %s441_s13 = scalar_lea.hbm %s698_s0, 256 }
   0x3   :  { %s15_s10 = sshll.u32 %s513_s9, 4  ;;  %p442_p0 = scmp.ne.s32.totalorder %s698_s0, %s441_s13  ;;  %s16_s10 = int_to_ptr.vmem [resolvable:$true] %s15_s10 }
   0x4   :  { %p445_p1 = scmp.lt.u32.totalorder %s441_s13, %s698_s0 }
   0x6   :  { %p447_p2 = pnand %p445_p1, %p442_p0 }
   0x8   :  { %450 = shalt.err (!%p447_p2)
}
   0x9   :  { %s451_s18 = scalar_lea.vmem %s16_s10, 256  ;;  %p456_p4 = scmp.lt.s32.totalorder %s16_s10, %s16_s10 }
   0xa   :  { %p452_p3 = scmp.ne.s32.totalorder %s16_s10, %s451_s18  ;;  %p457_p5 = scmp.lt.s32.totalorder %s451_s18, %s451_s18 }
   0xc   :  { %p458_p6 = por %p457_p5, %p456_p4 }
   0xe   :  { %p459_p7 = pnand %p458_p6, %p452_p3 }
  0x10   :  { %462 = shalt.err (!%p459_p7)
}
  0x11   :  { %s514_s19 = smov 128   ;;  %s515_s20 = smov 8  }
  0x12   :  { %21 = dma.hbm_to_vmem [thread:$0]  %s698_s0, 256, %s16_s10, [#allocation5], %s514_s19, %s514_s19, %s515_s20  }
  0x13   :  { %s516_s23 = smov [#allocation7]   ;;  %s463_s27 = scalar_lea.hbm %s699_s1, 64 }
  0x14   :  { %s27_s24 = sshll.u32 %s516_s23, 4  ;;  %p464_p8 = scmp.ne.s32.totalorder %s699_s1, %s463_s27  ;;  %s28_s24 = int_to_ptr.vmem [resolvable:$true] %s27_s24 }
  0x15   :  { %p467_p9 = scmp.lt.u32.totalorder %s463_s27, %s699_s1 }
  0x17   :  { %p469_p10 = pnand %p467_p9, %p464_p8 }
  0x19   :  { %472 = shalt.err (!%p469_p10)
}
  0x1a   :  { %s473_s4 = scalar_lea.vmem %s28_s24, 64  ;;  %p478_p12 = scmp.lt.s32.totalorder %s28_s24, %s28_s24 }
  0x1b   :  { %p474_p11 = scmp.ne.s32.totalorder %s28_s24, %s473_s4  ;;  %p479_p13 = scmp.lt.s32.totalorder %s473_s4, %s473_s4 }
  0x1d   :  { %p480_p0 = por %p479_p13, %p478_p12 }
  0x1f   :  { %p481_p1 = pnand %p480_p0, %p474_p11 }
  0x21   :  { %484 = shalt.err (!%p481_p1)
}
  0x22   :  { %s517_s0 = smov 32   ;;  %s518_s5 = smov 2  }
  0x23   :  { %33 = dma.hbm_to_vmem [thread:$0]  %s699_s1, 64, %s28_s24, [#allocation8], %s517_s0, %s517_s0, %s518_s5  }
  0x24   :  { %507 = dma.done.wait [#allocation5], 256  }
  0x25   :  { %508 = vsyncadd [#allocation5], 4294967040 }
  0x26   :  { %509 = dma.done.wait [#allocation8], 64  }
  0x27   :  { %510 = vsyncadd [#allocation8], 4294967232  ;;  %v55_v0 = vlaneseq  ;;  %vm115_vm0 = vcmask 1040384   ;;  %vm120_vm1 = vcmask 1041408   ;;  %vm125_vm2 = vcmask 1042432   ;;  %v49_v10 = vld [vmem:[#allocation4] sm:$0xff] }
  0x28   :  { %v51_v6 = vld [vmem:[#allocation7] sm:$0x3]  ;;  %v519_v12 = vmov 0.0   ;;  %v52_v29 = vld [vmem:[#allocation7 + $0x2] sm:$0x3]  ;;  %v50_v44 = vld [vmem:[#allocation4 + $0x8] sm:$0xff] }
  0x29   :  { %v564_v1 = vshrl.u32 %v55_v0, 7  ;;  %vm202_vm3 = vcmp.eq.s32.totalorder %v51_v6, 1  ;;  %vm208_vm4 = vcmp.eq.s32.totalorder %v51_v6, 2  ;;  %vm214_vm5 = vcmp.eq.s32.totalorder %v51_v6, 3  ;;  %s521_s1 = smov [#allocation9]  }
  0x2a   :  { %v404_v13 = vsel %vm202_vm3, 1.0, %v519_v12  ;;  %v406_v14 = vsel %vm208_vm4, 1.0, %v519_v12  ;;  %v408_v15 = vsel %vm214_vm5, 1.0, %v519_v12  ;;  %vm203_vm6 = vcmp.eq.s32.totalorder %v52_v29, 1  ;;  %s391_s8 = sshll.u32 %s521_s1, 4  ;;  %s392_s8 = int_to_ptr.vmem [resolvable:$true] %s391_s8 }
  0x2b   :  { %v567_v2 = vsub.s32 1, %v564_v1  ;;  %v61_v3 = vsub.s32 5, %v564_v1  ;;  %v77_v4 = vsub.s32 2, %v564_v1  ;;  %v572_v5 = vsub.s32 0, %v564_v1  ;;  %s485_s9 = scalar_lea.vmem %s392_s8, 256  ;;  %p490_p3 = scmp.lt.s32.totalorder %s392_s8, %s392_s8 }
  0x2c   :  { %v81_v7 = vsub.s32 6, %v564_v1  ;;  %v97_v8 = vsub.s32 3, %v564_v1  ;;  %v101_v9 = vsub.s32 7, %v564_v1  ;;  %v405_v43 = vsel %vm203_vm6, 1.0, %v519_v12  ;;  %p486_p2 = scmp.ne.s32.totalorder %s392_s8, %s485_s9  ;;  %p491_p4 = scmp.lt.s32.totalorder %s485_s9, %s485_s9 }
  0x2d   :  { %v58_v11 = vrot.slane %v49_v10, %v567_v2  ;;  %v62_v16 = vrot.slane %v49_v10, %v61_v3  ;;  %v225_v17 = vrot.slane %v404_v13, %v572_v5  ;;  %v229_v18 = vrot.slane %v404_v13, %v567_v2 }
  0x2e   :  { %v247_v19 = vrot.slane %v406_v14, %v572_v5  ;;  %v251_v20 = vrot.slane %v406_v14, %v567_v2  ;;  %v269_v21 = vrot.slane %v408_v15, %v572_v5  ;;  %v273_v22 = vrot.slane %v408_v15, %v567_v2  ;;  %p492_p5 = por %p491_p4, %p490_p3 }
  0x2f   :  { %v78_v23 = vrot.slane %v49_v10, %v77_v4  ;;  %v82_v24 = vrot.slane %v49_v10, %v81_v7  ;;  %v98_v27 = vrot.slane %v49_v10, %v97_v8  ;;  %v102_v28 = vrot.slane %v49_v10, %v101_v9 }
  0x30   :  { %v286_v25 = vsel %vm115_vm0, %v225_v17, %v247_v19  ;;  %v287_v26 = vsel %vm115_vm0, %v229_v18, %v251_v20  ;;  %vm209_vm7 = vcmp.eq.s32.totalorder %v52_v29, 2  ;;  %vm215_vm8 = vcmp.eq.s32.totalorder %v52_v29, 3  ;;  %p493_p6 = pnand %p492_p5, %p486_p2 }
  0x31   :  { %v600_v30 = vsel %vm120_vm1, %v286_v25, %v269_v21  ;;  %v603_v31 = vsel %vm120_vm1, %v287_v26, %v273_v22  ;;  %v116_v32 = vsel %vm115_vm0, %v58_v11, %v78_v23  ;;  %v117_v33 = vsel %vm115_vm0, %v62_v16, %v82_v24 }
  0x32   :  { %v327_v34 = vsel %vm125_vm2, %v600_v30, 0.0  ;;  %v328_v35 = vsel %vm125_vm2, %v603_v31, 0.0  ;;  %v121_v36 = vsel %vm120_vm1, %v116_v32, %v98_v27  ;;  %v122_v37 = vsel %vm120_vm1, %v117_v33, %v102_v28 }
  0x33   :  { %v329_v38 = vadd.f32 %v328_v35, %v327_v34  ;;  %v126_v39 = vsel %vm125_vm2, %v121_v36, -inf  ;;  %v133_v40 = vsel %vm125_vm2, %v122_v37, -inf  ;;  %v407_v45 = vsel %vm209_vm7, 1.0, %v519_v12 }
  0x34   :  { %v127_v41 = vrot.slane %v126_v39, 4  ;;  %v134_v42 = vrot.slane %v133_v40, 4  ;;  %v233_v46 = vrot.slane %v405_v43, %v572_v5  ;;  %v237_v47 = vrot.slane %v405_v43, %v567_v2 }
  0x35   :  { %330 = vadd.xlane.f32.xlu1 %v329_v38  ;;  %v409_v50 = vsel %vm215_vm8, 1.0, %v519_v12  ;;  %v255_v51 = vrot.slane %v407_v45, %v572_v5  ;;  %v259_v52 = vrot.slane %v407_v45, %v567_v2  ;;  %v66_v55 = vrot.slane %v50_v44, %v567_v2 }
  0x36   :  { %v128_v48 = vmax.f32 %v126_v39, %v127_v41  ;;  %v135_v49 = vmax.f32 %v133_v40, %v134_v42  ;;  %v277_v53 = vrot.slane %v409_v50, %v572_v5  ;;  %v281_v54 = vrot.slane %v409_v50, %v567_v2 }
  0x37   :  { %v288_v58 = vsel %vm115_vm0, %v233_v46, %v255_v51  ;;  %v70_v59 = vrot.slane %v50_v44, %v61_v3  ;;  %v289_v60 = vsel %vm115_vm0, %v237_v47, %v259_v52  ;;  %v86_v62 = vrot.slane %v50_v44, %v77_v4 }
  0x38   :  { %v129_v56 = vrot.slane %v128_v48, 2  ;;  %v136_v57 = vrot.slane %v135_v49, 2  ;;  %v630_v61 = vsel %vm120_vm1, %v288_v58, %v277_v53  ;;  %v90_v63 = vrot.slane %v50_v44, %v81_v7 }
  0x39   :  { %v637_v5 = vsel %vm120_vm1, %v289_v60, %v281_v54  ;;  %v332_v6 = vsel %vm125_vm2, %v630_v61, 0.0  ;;  %v106_v10 = vrot.slane %v50_v44, %v97_v8  ;;  %v110_v4 = vrot.slane %v50_v44, %v101_v9 }
  0x3a   :  { %v130_v0 = vmax.f32 %v128_v48, %v129_v56  ;;  %v137_v2 = vmax.f32 %v135_v49, %v136_v57  ;;  %v333_v3 = vsel %vm125_vm2, %v637_v5, 0.0  ;;  %v118_v11 = vsel %vm115_vm0, %v66_v55, %v86_v62 }
  0x3b   :  { %v334_v14 = vadd.f32 %v333_v3, %v332_v6  ;;  %v119_v15 = vsel %vm115_vm0, %v70_v59, %v90_v63  ;;  %v123_v16 = vsel %vm120_vm1, %v118_v11, %v106_v10  ;;  %vm44_vm9 = vcmask 2048  }
  0x3c   :  { %v131_v7 = vrot.slane %v130_v0, 1  ;;  %v138_v13 = vrot.slane %v137_v2, 1  ;;  %v124_v17 = vsel %vm120_vm1, %v119_v15, %v110_v4  ;;  %v140_v20 = vsel %vm125_vm2, %v123_v16, -inf  ;;  %47 = vst.msk [vmem:[#allocation3] sm:$0x7] %vm44_vm9, %v519_v12 }
  0x3d   :  { %335 = vadd.xlane.f32.xlu1 %v334_v14  ;;  %v147_v8 = vsel %vm125_vm2, %v124_v17, -inf  ;;  %v141_v1 = vrot.slane %v140_v20, 4  ;;  %45 = vst.msk [vmem:[#allocation2] sm:$0x7] %vm44_vm9, %v519_v12  ;;  %46 = vst.msk [vmem:[#allocation2 + $0x4] sm:$0x7] %vm44_vm9, %v519_v12 }
  0x3e   :  { %v132_v18 = vmax.f32 %v130_v0, %v131_v7  ;;  %v139_v19 = vmax.f32 %v137_v2, %v138_v13  ;;  %v148_v9 = vrot.slane %v147_v8, 4  ;;  %48 = vst.msk [vmem:[#allocation3 + $0x4] sm:$0x7] %vm44_vm9, %v519_v12 }
  0x3f   :  { %v142_v23 = vmax.f32 %v140_v20, %v141_v1 }
  0x40   :  { %v154_v21 = vsub.f32 %v121_v36, %v132_v18  ;;  %v155_v22 = vsub.f32 %v122_v37, %v139_v19  ;;  %v149_v24 = vmax.f32 %v147_v8, %v148_v9 }
  0x41   :  { %v143_v27 = vrot.slane %v142_v23, 2 }
  0x42   :  { %v158_v25 = vmul.f32 1.442695, %v154_v21  ;;  %v160_v26 = vmul.f32 1.442695, %v155_v22  ;;  %v150_v28 = vrot.slane %v149_v24, 2 }
  0x43   :  { %v144_v29 = vmax.f32 %v142_v23, %v143_v27 }
  0x44   :  { %421 = vpow2.f32 %v158_v25  ;;  %v151_v32 = vmax.f32 %v149_v24, %v150_v28 }
  0x45   :  { %423 = vpow2.f32 %v160_v26  ;;  %v145_v33 = vrot.slane %v144_v29, 1 }
  0x46   :  { %v152_v34 = vrot.slane %v151_v32, 1 }
  0x47   :  { %v146_v35 = vmax.f32 %v144_v29, %v145_v33 }
  0x48   :  { %v153_v36 = vmax.f32 %v151_v32, %v152_v34 }
  0x49   :  { %v156_v37 = vsub.f32 %v123_v16, %v146_v35  ;;  %v520_v35 = vmov 0  }
  0x4a   :  { %v157_v38 = vsub.f32 %v124_v17, %v153_v36  ;;  %419 = vset.pattern.permute.xlu0 %v520_v35  ;;  %420 = vset.pattern.permute.xlu1 %v520_v35 }
  0x4b   :  { %v162_v39 = vmul.f32 1.442695, %v156_v37 }
  0x4c   :  { %v164_v40 = vmul.f32 1.442695, %v157_v38  ;;  %v315_v38 = vld [vmem:[#allocation3] sm:$0x7] }
  0x4d   :  { %425 = vpow2.f32 %v162_v39 }
  0x4e   :  { %v422_v41 = vpop.eup %421  ;;  %427 = vpow2.f32 %v164_v40 }
  0x4f   :  { %v424_v42 = vpop.eup %423  ;;  %v166_v43 = vsel %vm125_vm2, %v422_v41, 0.0 }
  0x50   :  { %v167_v44 = vrot.slane %v166_v43, 4  ;;  %v173_v12 = vsel %vm125_vm2, %v424_v42, 0.0 }
  0x51   :  { %v174_v45 = vrot.slane %v173_v12, 4 }
  0x52   :  { %v168_v46 = vadd.f32 %v167_v44, %v166_v43 }
  0x53   :  { %v175_v47 = vadd.f32 %v174_v45, %v173_v12  ;;  %v294_v12 = vld [vmem:[#allocation2] sm:$0x7] }
  0x54   :  { %v169_v48 = vrot.slane %v168_v46, 2 }
  0x55   :  { %v176_v49 = vrot.slane %v175_v47, 2 }
  0x56   :  { %v170_v50 = vadd.f32 %v169_v48, %v168_v46 }
  0x57   :  { %v177_v51 = vadd.f32 %v176_v49, %v175_v47  ;;  %v426_v53 = vpop.eup %425 }
  0x58   :  { %v171_v52 = vrot.slane %v170_v50, 1  ;;  %v428_v55 = vpop.eup %427  ;;  %v180_v57 = vsel %vm125_vm2, %v426_v53, 0.0 }
  0x59   :  { %v178_v54 = vrot.slane %v177_v51, 1  ;;  %v181_v59 = vrot.slane %v180_v57, 4  ;;  %v187_v60 = vsel %vm125_vm2, %v428_v55, 0.0 }
  0x5a   :  { %v172_v56 = vadd.f32 %v171_v52, %v170_v50  ;;  %v188_v62 = vrot.slane %v187_v60, 4 }
  0x5b   :  { %v179_v58 = vadd.f32 %v178_v54, %v177_v51  ;;  %v182_v63 = vadd.f32 %v181_v59, %v180_v57 }
  0x5c   :  { %429 = vrcp.f32 %v172_v56  ;;  %v189_v0 = vadd.f32 %v188_v62, %v187_v60 }
  0x5d   :  { %431 = vrcp.f32 %v179_v58  ;;  %v183_v2 = vrot.slane %v182_v63, 2 }
  0x5e   :  { %v190_v6 = vrot.slane %v189_v0, 2 }
  0x5f   :  { %v184_v3 = vadd.f32 %v183_v2, %v182_v63 }
  0x60   :  { %v191_v10 = vadd.f32 %v190_v6, %v189_v0 }
  0x61   :  { %v185_v4 = vrot.slane %v184_v3, 1 }
  0x62   :  { %v192_v11 = vrot.slane %v191_v10, 1 }
  0x63   :  { %v186_v7 = vadd.f32 %v185_v4, %v184_v3 }
  0x64   :  { %v193_v14 = vadd.f32 %v192_v11, %v191_v10 }
  0x65   :  { %433 = vrcp.f32 %v186_v7 }
  0x66   :  { %v430_v13 = vpop.eup %429  ;;  %435 = vrcp.f32 %v193_v14 }
  0x67   :  { %v432_v15 = vpop.eup %431  ;;  %v198_v16 = vmul.f32 %v430_v13, %v422_v41  ;;  %v316_v41 = vld [vmem:[#allocation3 + $0x4] sm:$0x7] }
  0x68   :  { %v199_v17 = vmul.f32 %v432_v15, %v424_v42  ;;  %v295_v42 = vld [vmem:[#allocation2 + $0x4] sm:$0x7] }
  0x69   :  { %v296_v18 = vmul.f32 %v600_v30, %v198_v16  ;;  %v317_v19 = vsel %vm125_vm2, %v198_v16, 0.0 }
  0x6a   :  { %v297_v20 = vmul.f32 %v603_v31, %v199_v17  ;;  %v318_v8 = vsel %vm125_vm2, %v199_v17, 0.0 }
  0x6b   :  { %v319_v1 = vadd.f32 %v318_v8, %v317_v19  ;;  %v300_v9 = vsel %vm125_vm2, %v296_v18, 0.0 }
  0x6c   :  { %v301_v21 = vsel %vm125_vm2, %v297_v20, 0.0 }
  0x6d   :  { %320 = vadd.xlane.f32.xlu0 %v319_v1  ;;  %v302_v22 = vadd.f32 %v301_v21, %v300_v9 }
  0x6f   :  { %v434_v23 = vpop.eup %433 }
  0x70   :  { %v436_v24 = vpop.eup %435  ;;  %v200_v25 = vmul.f32 %v434_v23, %v426_v53 }
  0x71   :  { %v201_v26 = vmul.f32 %v436_v24, %v428_v55 }
  0x72   :  { %v322_v27 = vsel %vm125_vm2, %v200_v25, 0.0  ;;  %v298_v30 = vmul.f32 %v630_v61, %v200_v25 }
  0x73   :  { %v323_v28 = vsel %vm125_vm2, %v201_v26, 0.0  ;;  %v299_v31 = vmul.f32 %v637_v5, %v201_v26 }
  0x74   :  { %v324_v29 = vadd.f32 %v323_v28, %v322_v27  ;;  %v305_v32 = vsel %vm125_vm2, %v298_v30, 0.0 }
  0x75   :  { %v306_v33 = vsel %vm125_vm2, %v299_v31, 0.0 }
  0x76   :  { %325 = vadd.xlane.f32.xlu0 %v324_v29  ;;  %v307_v34 = vadd.f32 %v306_v33, %v305_v32 }
  0x78   :  { %308 = vadd.xlane.f32.xlu1 %v307_v34 }
  0x7a   :  { %303 = vadd.xlane.f32.xlu0 %v302_v22 }
  0xc2   :  { %v331_v36 = vpop.xlane.xlu1 %330 }
  0xca   :  { %v336_v5 = vpop.xlane.xlu1 %335 }
  0xfa   :  { %v321_v37 = vpop.xlane.xlu0 %320 }
  0xfb   :  { %v337_v61 = vadd.f32 %v331_v36, %v321_v37 }
  0xfd   :  { %v339_v39 = vadd.f32 %v337_v61, %v315_v38 }
  0xff   :  { %341 = vst.msk [vmem:[#allocation3] sm:$0x7] %vm44_vm9, %v339_v39 }
 0x103   :  { %v326_v40 = vpop.xlane.xlu0 %325 }
 0x104   :  { %v338_v43 = vadd.f32 %v336_v5, %v326_v40 }
 0x105   :  { %v309_v45 = vpop.xlane.xlu1 %308 }
 0x106   :  { %v352_v44 = vld [vmem:[#allocation3] sm:$0x7]  ;;  %v340_v47 = vadd.f32 %v338_v43, %v316_v41  ;;  %v311_v48 = vadd.f32 %v309_v45, %v295_v42 }
 0x107   :  { %v354_v46 = vadd.f32 0.01, %v352_v44  ;;  %v304_v49 = vpop.xlane.xlu0 %303 }
 0x108   :  { %342 = vst.msk [vmem:[#allocation3 + $0x4] sm:$0x7] %vm44_vm9, %v340_v47  ;;  %v310_v50 = vadd.f32 %v304_v49, %v294_v12  ;;  %314 = vst.msk [vmem:[#allocation2 + $0x4] sm:$0x7] %vm44_vm9, %v311_v48 }
 0x109   :  { %437 = vrcp.f32 %v354_v46 }
 0x10a   :  { %313 = vst.msk [vmem:[#allocation2] sm:$0x7] %vm44_vm9, %v310_v50 }
 0x10f   :  { %v353_v51 = vld [vmem:[#allocation3 + $0x4] sm:$0x7]  ;;  %v347_v55 = vld [vmem:[#allocation2 + $0x4] sm:$0x7] }
 0x110   :  { %v355_v52 = vadd.f32 0.01, %v353_v51  ;;  %v349_v58 = vadd.f32 0.01, %v347_v55 }
 0x111   :  { %v346_v53 = vld [vmem:[#allocation2] sm:$0x7] }
 0x112   :  { %v348_v54 = vadd.f32 0.01, %v346_v53  ;;  %439 = vrcp.f32 %v355_v52  ;;  %v351_v63 = vmul.f32 2.0, %v349_v58 }
 0x113   :  { %v438_v56 = vpop.eup %437 }
 0x114   :  { %v350_v57 = vmul.f32 2.0, %v348_v54 }
 0x116   :  { %v357_v59 = vmul.f32 %v438_v56, %v350_v57 }
 0x118   :  { %v360_v60 = vsel %vm44_vm9, %v357_v59, 0.0 }
 0x119   :  { %v361_v62 = vrot.slane %v360_v60, 4 }
 0x11b   :  { %v362_v0 = vadd.f32 %v361_v62, %v360_v60 }
 0x11c   :  { %v440_v2 = vpop.eup %439 }
 0x11d   :  { %v363_v6 = vrot.slane %v362_v0, 2  ;;  %v359_v3 = vmul.f32 %v440_v2, %v351_v63 }
 0x11f   :  { %v364_v10 = vadd.f32 %v363_v6, %v362_v0  ;;  %v367_v4 = vsel %vm44_vm9, %v359_v3, 0.0 }
 0x120   :  { %v368_v11 = vrot.slane %v367_v4, 4 }
 0x121   :  { %v365_v7 = vrot.slane %v364_v10, 1 }
 0x122   :  { %v369_v13 = vadd.f32 %v368_v11, %v367_v4 }
 0x123   :  { %v366_v14 = vadd.f32 %v365_v7, %v364_v10 }
 0x124   :  { %v370_v15 = vrot.slane %v369_v13, 2 }
 0x125   :  { %376 = vperm.xlu0 %419, %v366_v14  }
 0x126   :  { %v371_v16 = vadd.f32 %v370_v15, %v369_v13 }
 0x128   :  { %v372_v17 = vrot.slane %v371_v16, 1 }
 0x12a   :  { %v373_v18 = vadd.f32 %v372_v17, %v371_v16 }
 0x12c   :  { %381 = vperm.xlu1 %420, %v373_v18  }
 0x1a4   :  { %v377_v19 = vpop.permute.xlu0 %376 }
 0x1a5   :  { %384 = vst [vmem:[#allocation9] sm:$0xff] %v377_v19 }
 0x1ab   :  { %v382_v20 = vpop.permute.xlu1 %381 }
 0x1ac   :  { %385 = vst [vmem:[#allocation9 + $0x8] sm:$0xff] %v382_v20 }
 0x1ad   :  { %496 = shalt.err (!%p493_p6)
}
 0x1ae   :  { %s497_s12 = scalar_lea.hbm %s700_s2, 256 }
 0x1af   :  { %p498_p7 = scmp.ne.s32.totalorder %s700_s2, %s497_s12  ;;  %p501_p8 = scmp.lt.u32.totalorder %s497_s12, %s700_s2 }
 0x1b1   :  { %p503_p9 = pnand %p501_p8, %p498_p7 }
 0x1b3   :  { %506 = shalt.err (!%p503_p9)
}
 0x1b4   :  { %397 = dma.vmem_to_hbm [thread:$0]  %s392_s8, 256, %s700_s2, [#allocation6], %s514_s19, %s514_s19, %s515_s20  }
 0x1b5   :  { %511 = dma.done.wait [#allocation6], 256  }
 0x1b6   :  { %512 = vsyncadd [#allocation6], 4294967040 }
 0x1b7   :  { %401 = vsyncpa [#allocation5], 1 }
 0x1b8   :  { %402 = vsyncpa [#allocation8], 1 }
 0x1b9   :  { %403 = vsyncpa [#allocation6], 1 }

</bundles_post_ra>
